<compile_context>
chip_gen: v6e
topology: v6e:2x2x1
jax: 0.10.0
libtpu: 0.0.40
codegen_flags: <defaults>
</compile_context>

<pallas_src>
import numpy as np
import jax
import jax.numpy as jnp
from jax.experimental import pallas as pl
from jax.experimental.pallas import tpu as pltpu

# ---------------- hyper-parameters (MixMatch.__init__) ----------------
TEMPERATURE = 0.5   # self.T  (1/T == 2, exploited as e*e below)
N_AUGMENT = 2       # self.K
ALPHA = 0.75        # Beta(alpha, alpha)

NUM_CLASSES = 8


# ------------- fused kernel: model -> softmax -> sharpen -> mixup -> MSE -------------
def _mixmatch_kernel(lam_ref, invc_ref, kn_ref,     # SMEM scalars: lam, 1/(K*n*C), K*n
                     x_ref, w_ref, b_ref,           # VMEM: [B, D], [D, C], [1, C]
                     rep_ref, shuf_ref,             # VMEM int32: [K*B, 1] original-row ids
                     loss_ref):                     # SMEM out: [1, 1]
    lam = lam_ref[0, 0]
    one_m = 1.0 - lam

    # (1) logits for ALL B rows — the only D-sized matmul (MXU).  Selected rows are
    # picked out by the one-hot gathers below, so no [n, D] copy of x ever exists.
    logits = jnp.dot(x_ref[...], w_ref[...],
                     preferred_element_type=jnp.float32) + b_ref[...]

    # (2) softmax + sharpen fused:  sharpen(softmax(z)) with T = 0.5 equals
    #     e^2 / sum(e^2)  with  e = exp(z - max(z))   (one reduce, one reciprocal).
    # (K identical augmentations => averaged softmax == single softmax.)
    e = jnp.exp(logits - jnp.max(logits, axis=1, keepdims=True))
    e2 = e * e
    y_hat = e2 * pl.reciprocal(jnp.sum(e2, axis=1, keepdims=True), approx=True)

    # (3) one-hot gathers: position i of the K-repeated / shuffled batch -> original row.
    kb = rep_ref.shape[0]
    bsz = logits.shape[0]
    col = jax.lax.broadcasted_iota(jnp.int32, (kb, bsz), 1)
    rep_oh = (col == rep_ref[...]).astype(jnp.float32)     # [KB, B]
    shuf_oh = (col == shuf_ref[...]).astype(jnp.float32)   # [KB, B]

    lam_rep_oh = lam * rep_oh
    mix_oh = lam_rep_oh + one_m * shuf_oh                  # rows sum to 1 -> bias exact

    # model(mixed_x) = lam*model(u_x_hat) + (1-lam)*model(shuffled_u_x_hat)  (linearity)
    preds = jnp.dot(mix_oh, logits, preferred_element_type=jnp.float32)       # [KB, C]

    lam_y_rep = jnp.dot(lam_rep_oh, y_hat, preferred_element_type=jnp.float32)
    y_shf = jnp.dot(shuf_oh, y_hat, preferred_element_type=jnp.float32)

    # softmax of the shuffled targets (as in the reference).  Entries are
    # probabilities in [0, 1], so the max-subtraction is unnecessary
    # (mathematically identical, saves one cross-lane reduce).
    se = jnp.exp(y_shf)
    y_shf_soft = se * pl.reciprocal(jnp.sum(se, axis=1, keepdims=True), approx=True)
    mixed_y = lam_y_rep + one_m * y_shf_soft

    # (4) F.mse_loss over the K*n valid rows (rows >= K*n are fixed-capacity padding)
    valid = (jax.lax.broadcasted_iota(jnp.int32, (kb, 1), 0)
             < kn_ref[0, 0]).astype(jnp.float32)
    diff = preds - mixed_y
    loss_ref[0, 0] = jnp.sum(valid * (diff * diff)) * invc_ref[0, 0]


def _vmem_spec():
    return pl.BlockSpec(memory_space=pltpu.MemorySpace.VMEM)


def _smem_spec():
    return pl.BlockSpec(memory_space=pltpu.MemorySpace.SMEM)


def _fused_mixmatch(lam, inv_count, kn, x_flat, W, b, rep_idx, shuf_idx):
    loss = pl.pallas_call(
        _mixmatch_kernel,
        out_shape=jax.ShapeDtypeStruct((1, 1), jnp.float32),
        in_specs=[
            _smem_spec(), _smem_spec(), _smem_spec(),   # lam, 1/(K*n*C), K*n
            _vmem_spec(), _vmem_spec(), _vmem_spec(),   # x_flat, W, b
            _vmem_spec(), _vmem_spec(),                 # rep_idx, shuf_idx
        ],
        out_specs=_smem_spec(),
    )(
        jnp.asarray(lam, jnp.float32).reshape(1, 1),
        jnp.asarray(inv_count, jnp.float32).reshape(1, 1),
        jnp.asarray(kn, jnp.int32).reshape(1, 1),
        x_flat, W, b, rep_idx, shuf_idx,
    )
    return loss[0, 0]


@jax.jit
def mixmatch_forward(x, y, mask, W, b, key):
    """Reproduces MixMatch.forward(x, y, model, mask) with model = (W, b) linear classifier.

    `y` is accepted but unused, exactly as in the PyTorch module.  The boolean-mask
    selection, K-fold repeat and torch.randperm are expressed as int32 row-index
    vectors into the ORIGINAL batch; positions beyond the true count K*n are masked
    out of the loss, so the math matches x[mask == 1] exactly with static shapes.
    """
    del y  # unused in the reference forward
    B = x.shape[0]
    D = x.shape[1] * x.shape[2] * x.shape[3]
    x_flat = x.reshape(B, D).astype(jnp.float32)

    mask_i = mask.astype(jnp.int32)
    n = jnp.sum(mask_i)                                   # number of selected rows
    # selected (mask==1) original-row indices first, in original order
    sel_idx = jnp.argsort(1 - mask_i, stable=True)        # [B]

    KB = N_AUGMENT * B
    kn = N_AUGMENT * n
    pos = jnp.arange(KB)
    n_safe = jnp.maximum(n, 1)
    # original x-row that position i of the K-times-repeated selected batch refers to
    rep_idx = jnp.where(pos < kn, jnp.take(sel_idx, pos % n_safe), 0).astype(jnp.int32)

    # uniform random permutation of the first K*n positions (== torch.randperm(K*n))
    k_perm, k_beta = jax.random.split(key)
    keys_u = jax.random.uniform(k_perm, (KB,))
    keys_u = jnp.where(pos < kn, keys_u, 2.0)             # padding sorts to the end
    perm = jnp.argsort(keys_u)                            # perm[:K*n] is a random perm
    shuf_idx = jnp.take(rep_idx, perm).astype(jnp.int32)  # original row after shuffling

    # lam ~ Beta(alpha, alpha)   (reference does NOT take max(lam, 1-lam))
    lam = jax.random.beta(k_beta, ALPHA, ALPHA).astype(jnp.float32)

    inv_count = 1.0 / jnp.maximum(kn * NUM_CLASSES, 1).astype(jnp.float32)

    return _fused_mixmatch(lam, inv_count, kn, x_flat, W, b,
                           rep_idx[:, None], shuf_idx[:, None])


if __name__ == "__main__":
    key = jax.random.PRNGKey(0)
    k_x, k_w, k_fwd = jax.random.split(key, 3)

    B, C, H, Wdim = 8, 4, 8, 8          # small NCHW input
    D = C * H * Wdim                    # 256

    x = jax.random.normal(k_x, (B, C, H, Wdim), jnp.float32)
    y = jnp.zeros((B,), jnp.int32)      # unused by forward (matches reference)
    mask = jnp.array([1, 0, 1, 1, 0, 1, 1, 0], jnp.int32)

    # deterministic "model" parameters (linear classifier)
    W = jax.random.normal(k_w, (D, NUM_CLASSES), jnp.float32) * 0.02
    b = jnp.zeros((1, NUM_CLASSES), jnp.float32)

    loss = mixmatch_forward(x, y, mask, W, b, k_fwd)
    jax.block_until_ready(loss)
    assert np.isfinite(float(loss))
    print("KERNEL_OK")
</pallas_src>

<mosaic_0001>
module attributes {stable_mosaic.version = 11 : i64} {
  func.func @_mixmatch_kernel(%arg0: memref<1x1xf32, #tpu.memory_space<smem>>, %arg1: memref<1x1xf32, #tpu.memory_space<smem>>, %arg2: memref<1x1xi32, #tpu.memory_space<smem>>, %arg3: memref<8x256xf32, #tpu.memory_space<vmem>>, %arg4: memref<256x8xf32, #tpu.memory_space<vmem>>, %arg5: memref<1x8xf32, #tpu.memory_space<vmem>>, %arg6: memref<16x1xi32, #tpu.memory_space<vmem>>, %arg7: memref<16x1xi32, #tpu.memory_space<vmem>>, %arg8: memref<1x1xf32, #tpu.memory_space<smem>>) attributes {dimension_semantics = [], scalar_prefetch = 0 : i64, scratch_operands = 0 : i64, tpu.core_type = #tpu.core_type<tc>} {
    %c0 = arith.constant 0 : index
    %c0_0 = arith.constant 0 : index
    %0 = memref.load %arg0[%c0, %c0_0] : memref<1x1xf32, #tpu.memory_space<smem>>
    %cst = arith.constant 1.000000e+00 : f32
    %1 = arith.subf %cst, %0 : f32
    %c0_1 = arith.constant 0 : index
    %c0_2 = arith.constant 0 : index
    %2 = vector.load %arg3[%c0_1, %c0_2] : memref<8x256xf32, #tpu.memory_space<vmem>>, vector<8x256xf32>
    %c0_3 = arith.constant 0 : index
    %c0_4 = arith.constant 0 : index
    %3 = vector.load %arg4[%c0_3, %c0_4] : memref<256x8xf32, #tpu.memory_space<vmem>>, vector<256x8xf32>
    %cst_5 = arith.constant dense<0.000000e+00> : vector<8x8xf32>
    %4 = tpu.matmul %2, %3, %cst_5 {dimension_numbers = #tpu.dot_dimension_numbers<[1], [0], [0], [1], [0, 0, 1, 1], [], []>} : vector<8x256xf32>, vector<256x8xf32>, vector<8x8xf32> -> vector<8x8xf32>
    %c0_6 = arith.constant 0 : index
    %c0_7 = arith.constant 0 : index
    %5 = vector.load %arg5[%c0_6, %c0_7] : memref<1x8xf32, #tpu.memory_space<vmem>>, vector<1x8xf32>
    %6 = vector.broadcast %5 : vector<1x8xf32> to vector<8x8xf32>
    %7 = arith.addf %4, %6 : vector<8x8xf32>
    %cst_8 = arith.constant dense<0xFF800000> : vector<8xf32>
    %8 = vector.multi_reduction <maximumf>, %7, %cst_8 [1] : vector<8x8xf32> to vector<8xf32>
    %9 = vector.shape_cast %8 : vector<8xf32> to vector<8x1xf32>
    %10 = vector.broadcast %9 : vector<8x1xf32> to vector<8x8xf32>
    %11 = arith.subf %7, %10 : vector<8x8xf32>
    %12 = math.exp %11 : vector<8x8xf32>
    %13 = arith.mulf %12, %12 : vector<8x8xf32>
    %cst_9 = arith.constant dense<0.000000e+00> : vector<8xf32>
    %14 = vector.multi_reduction <add>, %13, %cst_9 [1] : vector<8x8xf32> to vector<8xf32>
    %15 = vector.shape_cast %14 : vector<8xf32> to vector<8x1xf32>
    %16 = tpu.reciprocal %15 {approx = true} : vector<8x1xf32> -> vector<8x1xf32>
    %17 = vector.broadcast %16 : vector<8x1xf32> to vector<8x8xf32>
    %18 = arith.mulf %13, %17 : vector<8x8xf32>
    %19 = tpu.iota {dimensions = array<i32: 1>} : vector<16x8xi32>
    %c0_10 = arith.constant 0 : index
    %c0_11 = arith.constant 0 : index
    %20 = vector.load %arg6[%c0_10, %c0_11] : memref<16x1xi32, #tpu.memory_space<vmem>>, vector<16x1xi32>
    %21 = vector.broadcast %20 : vector<16x1xi32> to vector<16x8xi32>
    %22 = arith.cmpi eq, %19, %21 : vector<16x8xi32>
    %23 = arith.extui %22 : vector<16x8xi1> to vector<16x8xi32>
    %24 = arith.sitofp %23 : vector<16x8xi32> to vector<16x8xf32>
    %c0_12 = arith.constant 0 : index
    %c0_13 = arith.constant 0 : index
    %25 = vector.load %arg7[%c0_12, %c0_13] : memref<16x1xi32, #tpu.memory_space<vmem>>, vector<16x1xi32>
    %26 = vector.broadcast %25 : vector<16x1xi32> to vector<16x8xi32>
    %27 = arith.cmpi eq, %19, %26 : vector<16x8xi32>
    %28 = arith.extui %27 : vector<16x8xi1> to vector<16x8xi32>
    %29 = arith.sitofp %28 : vector<16x8xi32> to vector<16x8xf32>
    %30 = vector.broadcast %0 : f32 to vector<16x8xf32>
    %31 = arith.mulf %30, %24 : vector<16x8xf32>
    %32 = vector.broadcast %1 : f32 to vector<16x8xf32>
    %33 = arith.mulf %32, %29 : vector<16x8xf32>
    %34 = arith.addf %31, %33 : vector<16x8xf32>
    %cst_14 = arith.constant dense<0.000000e+00> : vector<16x8xf32>
    %35 = tpu.matmul %34, %7, %cst_14 {dimension_numbers = #tpu.dot_dimension_numbers<[1], [0], [0], [1], [0, 0, 1, 1], [], []>} : vector<16x8xf32>, vector<8x8xf32>, vector<16x8xf32> -> vector<16x8xf32>
    %cst_15 = arith.constant dense<0.000000e+00> : vector<16x8xf32>
    %36 = tpu.matmul %31, %18, %cst_15 {dimension_numbers = #tpu.dot_dimension_numbers<[1], [0], [0], [1], [0, 0, 1, 1], [], []>} : vector<16x8xf32>, vector<8x8xf32>, vector<16x8xf32> -> vector<16x8xf32>
    %cst_16 = arith.constant dense<0.000000e+00> : vector<16x8xf32>
    %37 = tpu.matmul %29, %18, %cst_16 {dimension_numbers = #tpu.dot_dimension_numbers<[1], [0], [0], [1], [0, 0, 1, 1], [], []>} : vector<16x8xf32>, vector<8x8xf32>, vector<16x8xf32> -> vector<16x8xf32>
    %38 = math.exp %37 : vector<16x8xf32>
    %cst_17 = arith.constant dense<0.000000e+00> : vector<16xf32>
    %39 = vector.multi_reduction <add>, %38, %cst_17 [1] : vector<16x8xf32> to vector<16xf32>
    %40 = vector.shape_cast %39 : vector<16xf32> to vector<16x1xf32>
    %41 = tpu.reciprocal %40 {approx = true} : vector<16x1xf32> -> vector<16x1xf32>
    %42 = vector.broadcast %41 : vector<16x1xf32> to vector<16x8xf32>
    %43 = arith.mulf %38, %42 : vector<16x8xf32>
    %44 = vector.broadcast %1 : f32 to vector<16x8xf32>
    %45 = arith.mulf %44, %43 : vector<16x8xf32>
    %46 = arith.addf %36, %45 : vector<16x8xf32>
    %47 = tpu.iota {dimensions = array<i32: 0>} : vector<16x1xi32>
    %c0_18 = arith.constant 0 : index
    %c0_19 = arith.constant 0 : index
    %48 = memref.load %arg2[%c0_18, %c0_19] : memref<1x1xi32, #tpu.memory_space<smem>>
    %49 = vector.broadcast %48 : i32 to vector<16x1xi32>
    %50 = arith.cmpi slt, %47, %49 : vector<16x1xi32>
    %51 = arith.extui %50 : vector<16x1xi1> to vector<16x1xi32>
    %52 = arith.sitofp %51 : vector<16x1xi32> to vector<16x1xf32>
    %53 = arith.subf %35, %46 : vector<16x8xf32>
    %54 = arith.mulf %53, %53 : vector<16x8xf32>
    %55 = vector.broadcast %52 : vector<16x1xf32> to vector<16x8xf32>
    %56 = arith.mulf %55, %54 : vector<16x8xf32>
    %57 = vector.shape_cast %56 : vector<16x8xf32> to vector<1x16x8xf32>
    %cst_20 = arith.constant dense<0.000000e+00> : vector<1xf32>
    %58 = vector.multi_reduction <add>, %57, %cst_20 [1, 2] : vector<1x16x8xf32> to vector<1xf32>
    %59 = vector.shape_cast %58 : vector<1xf32> to vector<1x1x1xf32>
    %60 = vector.extract %59[0, 0, 0] : f32 from vector<1x1x1xf32>
    %c0_21 = arith.constant 0 : index
    %c0_22 = arith.constant 0 : index
    %61 = memref.load %arg1[%c0_21, %c0_22] : memref<1x1xf32, #tpu.memory_space<smem>>
    %62 = arith.mulf %60, %61 : f32
    %c0_23 = arith.constant 0 : index
    %c0_24 = arith.constant 0 : index
    %63 = memref.load %arg8[%c0_23, %c0_24] : memref<1x1xf32, #tpu.memory_space<smem>>
    memref.store %62, %arg8[%c0_23, %c0_24] : memref<1x1xf32, #tpu.memory_space<smem>>
    return
  }
}

</mosaic_0001>

<bundles_post_ra>
// kernel: mixmatch_forward.1
= control target key start
LH: loop header
LB: loop body
LE: loop exit
PB: predicated region body
PF: predicated region fallthrough
CT: control target
= control target key end

     0   :  { %s803_s0 = inlined_call_operand.<no memory space> [shape: f32[1,1], index: 0, kind: input, shape index: {}]   ;;  %s804_s1 = inlined_call_operand.<no memory space> [shape: f32[1,1], index: 1, kind: input, shape index: {}]   ;;  %s805_s2 = inlined_call_operand.<no memory space> [shape: s32[1,1], index: 2, kind: input, shape index: {}]   ;;  %s806_s3 = inlined_call_operand.vmem [shape: f32[8,256], index: 3, kind: input, shape index: {}]   ;;  %s807_s4 = inlined_call_operand.vmem [shape: f32[256,8], index: 4, kind: input, shape index: {}]   ;;  %s808_s5 = inlined_call_operand.vmem [shape: f32[1,8], index: 5, kind: input, shape index: {}]   ;;  %s809_s6 = inlined_call_operand.vmem [shape: s32[16,1], index: 6, kind: input, shape index: {}]   ;;  %s810_s7 = inlined_call_operand.vmem [shape: s32[16,1], index: 7, kind: input, shape index: {}]   ;;  %s811_s8 = inlined_call_operand.hbm [shape: f32[1,1], index: 8, kind: output, shape index: {}]  }
   0x1   :  { %v68_v0 = vld [vmem:[%s807_s4 + $0xf8] sm:$0xff]  ;;  %v67_v2 = vld [vmem:[%s807_s4 + $0xf0] sm:$0xff]  ;;  %v66_v4 = vld [vmem:[%s807_s4 + $0xe8] sm:$0xff] }
   0x2   :  { %v52_v1 = vld [vmem:[%s807_s4 + $0x78] sm:$0xff]  ;;  %515 = vmatprep.subr.mxu0 %v68_v0  ;;  %v51_v3 = vld [vmem:[%s807_s4 + $0x70] sm:$0xff]  ;;  %v50_v5 = vld [vmem:[%s807_s4 + $0x68] sm:$0xff] }
   0x3   :  { %516 = vmatpush3.msra.mxu0 %v52_v1  ;;  %v65_v6 = vld [vmem:[%s807_s4 + $0xe0] sm:$0xff]  ;;  %v64_v8 = vld [vmem:[%s807_s4 + $0xd8] sm:$0xff]  ;;  %v63_v10 = vld [vmem:[%s807_s4 + $0xd0] sm:$0xff] }
   0x4   :  { %517 = vmatprep.subr.mxu0 %v67_v2  ;;  %v49_v7 = vld [vmem:[%s807_s4 + $0x60] sm:$0xff]  ;;  %v48_v9 = vld [vmem:[%s807_s4 + $0x58] sm:$0xff]  ;;  %v47_v11 = vld [vmem:[%s807_s4 + $0x50] sm:$0xff] }
   0x5   :  { %518 = vmatpush3.msra.mxu0 %v51_v3  ;;  %v62_v12 = vld [vmem:[%s807_s4 + $0xc8] sm:$0xff] }
   0x6   :  { %519 = vmatprep.subr.mxu0 %v66_v4  ;;  %v36_v13 = vld [vmem:[%s806_s3 + $0x8] sm:$0xff] }
   0x7   :  { %520 = vmatpush3.msra.mxu0 %v50_v5  ;;  %v46_v14 = vld [vmem:[%s807_s4 + $0x48] sm:$0xff]  ;;  %140 = vmatprep.mubr.f32.mxu0 %v36_v13 }
   0x8   :  { %521 = vmatprep.subr.mxu0 %v65_v6 }
   0x9   :  { %522 = vmatpush3.msra.mxu0 %v49_v7 }
   0xa   :  { %523 = vmatprep.subr.mxu0 %v64_v8 }
   0xb   :  { %524 = vmatpush3.msra.mxu0 %v48_v9 }
   0xc   :  { %525 = vmatprep.subr.mxu0 %v63_v10 }
   0xd   :  { %16 = vsyncpa [#allocation6], 0  ;;  %526 = vmatpush3.msra.mxu0 %v47_v11  ;;  %v61_v15 = vld [vmem:[%s807_s4 + $0xc0] sm:$0xff]  ;;  %v60_v17 = vld [vmem:[%s807_s4 + $0xb8] sm:$0xff]  ;;  %vm146_vm0 = vcmask 64512   ;;  %v603_v41 = vmov 0   ;;  %v159_v48 = vlaneseq  ;;  %v189_v54 = vstv %s803_s0 }
   0xe   :  { %527 = vmatprep.subr.mxu0 %v62_v12  ;;  %v45_v16 = vld [vmem:[%s807_s4 + $0x40] sm:$0xff]  ;;  %v44_v18 = vld [vmem:[%s807_s4 + $0x38] sm:$0xff]  ;;  %v59_v19 = vld [vmem:[%s807_s4 + $0xb0] sm:$0xff]  ;;  %579 = vset.pattern.permute.xlu1 %v603_v41  ;;  %s34_s14 = ssub.f32 1.0, %s803_s0  ;;  %v604_v55 = vmov 0.0   ;;  %s605_s21 = smov [#allocation5]  }
   0xf   :  { %528 = vmatpush3.msra.mxu0 %v46_v14  ;;  %v43_v20 = vld [vmem:[%s807_s4 + $0x30] sm:$0xff]  ;;  %v58_v21 = vld [vmem:[%s807_s4 + $0xa8] sm:$0xff]  ;;  %v57_v23 = vld [vmem:[%s807_s4 + $0xa0] sm:$0xff]  ;;  %580 = vset.pattern.permute.xlu0 %v603_v41  ;;  %v160_v52 = vand.u32 127, %v159_v48 }
  0x10   :  { %529 = vmatprep.subr.mxu0 %v61_v15  ;;  %v42_v22 = vld [vmem:[%s807_s4 + $0x28] sm:$0xff]  ;;  %v41_v24 = vld [vmem:[%s807_s4 + $0x20] sm:$0xff]  ;;  %v56_v25 = vld [vmem:[%s807_s4 + $0x98] sm:$0xff]  ;;  %v192_v58 = vstv %s34_s14 }
  0x11   :  { %530 = vmatpush3.msra.mxu0 %v45_v16  ;;  %v40_v26 = vld [vmem:[%s807_s4 + $0x18] sm:$0xff]  ;;  %v55_v27 = vld [vmem:[%s807_s4 + $0x90] sm:$0xff]  ;;  %v54_v29 = vld [vmem:[%s807_s4 + $0x88] sm:$0xff] }
  0x12   :  { %531 = vmatprep.subr.mxu0 %v60_v17  ;;  %v39_v28 = vld [vmem:[%s807_s4 + $0x10] sm:$0xff]  ;;  %v38_v30 = vld [vmem:[%s807_s4 + $0x8] sm:$0xff]  ;;  %v53_v31 = vld [vmem:[%s807_s4 + $0x80] sm:$0xff] }
  0x13   :  { %532 = vmatpush3.msra.mxu0 %v44_v18  ;;  %v37_v32 = vld [vmem:[%s807_s4] sm:$0xff]  ;;  %v176_v43 = vld [vmem:[%s810_s7 + $0x8] sm:$0xff] }
  0x14   :  { %533 = vmatprep.subr.mxu0 %v59_v19  ;;  %v35_v33 = vld [vmem:[%s806_s3] sm:$0xff]  ;;  %v162_v62 = vld [vmem:[%s809_s6 + $0x8] sm:$0xff] }
  0x15   :  { %534 = vmatpush3.msra.mxu0 %v43_v20  ;;  %v502_v35 = vld [vmem:[%s808_s5] ss:$0 sm:$0xff] }
  0x16   :  { %535 = vmatprep.subr.mxu0 %v58_v21  ;;  %v161_v40 = vld [vmem:[%s809_s6] sm:$0xff] }
  0x17   :  { %536 = vmatpush3.msra.mxu0 %v42_v22  ;;  %164 = vperm.xlu1 %579, %v161_v40   ;;  %v175_v42 = vld [vmem:[%s810_s7] sm:$0xff] }
  0x18   :  { %537 = vmatprep.subr.mxu0 %v57_v23 }
  0x19   :  { %538 = vmatpush3.msra.mxu0 %v41_v24 }
  0x1a   :  { %539 = vmatprep.subr.mxu0 %v56_v25  ;;  %v457_v25 = vshrl.u32 %v159_v48, 7 }
  0x1b   :  { %540 = vmatpush3.msra.mxu0 %v40_v26  ;;  %178 = vperm.xlu1 %579, %v175_v42  }
  0x1c   :  { %541 = vmatprep.subr.mxu0 %v55_v27 }
  0x1d   :  { %542 = vmatpush3.msra.mxu0 %v39_v28  ;;  %v460_v28 = vstv %s805_s2 }
  0x1e   :  { %543 = vmatprep.subr.mxu0 %v54_v29  ;;  %vm461_vm5 = vcmp.lt.s32.totalorder %v457_v25, %v460_v28 }
  0x1f   :  { %544 = vmatpush3.msra.mxu0 %v38_v30  ;;  %181 = vperm.xlu1 %579, %v176_v43  }
  0x20   :  { %545 = vmatprep.subr.mxu0 %v53_v31  ;;  %v458_v31 = vadd.s32 8, %v457_v25 }
  0x21   :  { %546 = vmatpush3.msra.mxu0 %v37_v32 }
  0x22   :  { %141 = vmatmul.mubr.f32.vlgmr.msra.gmra.mxu0 %v35_v33  ;;  %vm462_vm6 = vcmp.lt.s32.totalorder %v458_v31, %v460_v28 }
  0x92   :  { %v165_v50 = vpop.permute.xlu1 %164 }
  0x93   :  { %vm169_vm1 = vcmp.eq.s32.totalorder %v160_v52, %v165_v50 }
  0x94   :  { %v503_v56 = vsel %vm169_vm1, 1.0, %v604_v55 }
  0x95   :  { %v190_v59 = vmul.f32 %v503_v56, %v189_v54 }
  0x96   :  { %v179_v53 = vpop.permute.xlu1 %178 }
  0x97   :  { %vm183_vm2 = vcmp.eq.s32.totalorder %v160_v52, %v179_v53 }
  0x98   :  { %v505_v57 = vsel %vm183_vm2, 1.0, %v604_v55 }
  0x99   :  { %v193_v60 = vmul.f32 %v505_v57, %v192_v58 }
  0x9a   :  { %v182_v0 = vpop.permute.xlu1 %181 }
  0x9b   :  { %v195_v61 = vadd.f32 %v193_v60, %v190_v59  ;;  %vm184_vm3 = vcmp.eq.s32.totalorder %v160_v52, %v182_v0 }
  0x9c   :  { %v506_v1 = vsel %vm184_vm3, 1.0, %v604_v55 }
  0x9d   :  { %561 = vmatprep.mubr.msk.f32.mxu1 %vm146_vm0, %v195_v61  ;;  %v194_v4 = vmul.f32 %v506_v1, %v192_v58 }
  0xe2   :  { %v547_v34 = vpop.f32.mrf.mxu0 }
  0xe4   :  { %v548_v36 = vpop.f32.mrf.mxu0 }
  0xe5   :  { %v549_v37 = vadd.f32 %v548_v36, %v547_v34  ;;  %v513_v36 = vsel %vm461_vm5, 1.0, %v604_v55 }
  0xe7   :  { %v143_v38 = vadd.f32 %v549_v37, %v502_v35 }
  0xe9   :  { %559 = vmatprep.subr.mxu1 %v143_v38  ;;  %v147_v39 = vsel %vm146_vm0, %v143_v38, -inf }
  0xea   :  { %560 = vmatpush3.msra.mxu1 %v143_v38  ;;  %148 = vmax.xlane.f32.xlu0 %v147_v39 }
 0x173   :  { %v149_v44 = vpop.xlane.xlu0 %148 }
 0x174   :  { %v150_v45 = vsub.f32 %v143_v38, %v149_v44  ;;  %v514_v38 = vsel %vm462_vm6, 1.0, %v604_v55 }
 0x176   :  { %v151_v46 = vmul.f32 1.442695, %v150_v45 }
 0x178   :  { %581 = vpow2.f32 %v151_v46 }
 0x185   :  { %v582_v47 = vpop.eup %581 }
 0x186   :  { %v153_v49 = vmul.f32 %v582_v47, %v582_v47 }
 0x188   :  { %v154_v51 = vsel %vm146_vm0, %v153_v49, 0.0 }
 0x189   :  { %155 = vadd.xlane.f32.xlu0 %v154_v51 }
 0x19f   :  { %167 = vperm.xlu0 %580, %v162_v62  }
 0x212   :  { %v156_v63 = vpop.xlane.xlu0 %155 }
 0x213   :  { %583 = vrcp.f32 %v156_v63 }
 0x21a   :  { %v168_v2 = vpop.permute.xlu0 %167 }
 0x21b   :  { %vm170_vm4 = vcmp.eq.s32.totalorder %v160_v52, %v168_v2 }
 0x21c   :  { %v504_v3 = vsel %vm170_vm4, 1.0, %v604_v55 }
 0x21d   :  { %v191_v5 = vmul.f32 %v504_v3, %v189_v54 }
 0x21f   :  { %v196_v6 = vadd.f32 %v194_v4, %v191_v5 }
 0x220   :  { %v584_v7 = vpop.eup %583 }
 0x221   :  { %562 = vmatmul.mubr.msk.f32.vlgmr.msra.gmra.mxu1 %vm146_vm0, %v196_v6  ;;  %v158_v8 = vmul.f32 %v584_v7, %v153_v49 }
 0x222   :  { %566 = vmatprep.mubr.msk.f32.mxu1 %vm146_vm0, %v505_v57 }
 0x223   :  { %564 = vmatprep.subr.mxu1 %v158_v8 }
 0x224   :  { %565 = vmatpush3.msra.mxu1 %v158_v8 }
 0x225   :  { %567 = vmatmul.mubr.msk.f32.vlgmr.msra.gmra.mxu1 %vm146_vm0, %v506_v1  ;;  %569 = vmatprep.subr.mxu1 %v158_v8 }
 0x226   :  { %570 = vmatpush3.msra.mxu1 %v158_v8  ;;  %571 = vmatprep.mubr.msk.f32.mxu1 %vm146_vm0, %v190_v59 }
 0x229   :  { %572 = vmatmul.mubr.msk.f32.vlgmr.msra.gmra.mxu1 %vm146_vm0, %v191_v5 }
 0x2e1   :  { %v563_v9 = vpop.f32.mrf.mxu1 }
 0x2e3   :  { %v269_v10 = vpop.f32.mrf.mxu1 }
 0x2e5   :  { %v568_v11 = vpop.f32.mrf.mxu1 }
 0x2e6   :  { %v361_v13 = vmul.f32 1.442695, %v568_v11 }
 0x2e7   :  { %v350_v12 = vpop.f32.mrf.mxu1 }
 0x2e8   :  { %v359_v14 = vmul.f32 1.442695, %v350_v12 }
 0x2e9   :  { %v573_v22 = vpop.f32.mrf.mxu1 }
 0x2ea   :  { %585 = vpow2.f32 %v359_v14 }
 0x2eb   :  { %587 = vpow2.f32 %v361_v13  ;;  %v447_v27 = vpop.f32.mrf.mxu1 }
 0x2f7   :  { %v586_v15 = vpop.eup %585 }
 0x2f8   :  { %v363_v16 = vsel %vm146_vm0, %v586_v15, 0.0  ;;  %v588_v17 = vpop.eup %587 }
 0x2f9   :  { %364 = vadd.xlane.f32.xlu1 %v363_v16  ;;  %v366_v18 = vsel %vm146_vm0, %v588_v17, 0.0 }
 0x2fd   :  { %367 = vadd.xlane.f32.xlu1 %v366_v18 }
 0x382   :  { %v365_v19 = vpop.xlane.xlu1 %364 }
 0x383   :  { %589 = vrcp.f32 %v365_v19 }
 0x386   :  { %v368_v20 = vpop.xlane.xlu1 %367 }
 0x387   :  { %591 = vrcp.f32 %v368_v20 }
 0x390   :  { %v590_v21 = vpop.eup %589 }
 0x391   :  { %v371_v23 = vmul.f32 %v590_v21, %v586_v15 }
 0x393   :  { %v373_v24 = vmul.f32 %v371_v23, %v192_v58 }
 0x394   :  { %v592_v26 = vpop.eup %591 }
 0x395   :  { %v372_v29 = vmul.f32 %v592_v26, %v588_v17  ;;  %v448_v30 = vadd.f32 %v447_v27, %v373_v24 }
 0x397   :  { %v374_v32 = vmul.f32 %v372_v29, %v192_v58  ;;  %v467_v33 = vsub.f32 %v269_v10, %v448_v30 }
 0x399   :  { %v453_v34 = vadd.f32 %v573_v22, %v374_v32  ;;  %v469_v35 = vmul.f32 %v467_v33, %v467_v33 }
 0x39b   :  { %v468_v37 = vsub.f32 %v563_v9, %v453_v34  ;;  %v471_v40 = vmul.f32 %v513_v36, %v469_v35 }
 0x39d   :  { %v470_v39 = vmul.f32 %v468_v37, %v468_v37  ;;  %v473_v42 = vsel %vm146_vm0, %v471_v40, 0.0 }
 0x39f   :  { %v472_v41 = vmul.f32 %v514_v38, %v470_v39 }
 0x3a1   :  { %v474_v43 = vsel %vm146_vm0, %v472_v41, 0.0 }
 0x3a2   :  { %v475_v44 = vadd.f32 %v474_v43, %v473_v42 }
 0x3a4   :  { %476 = vadd.xlane.f32.xlu0 %v475_v44 }
 0x42d   :  { %v477_v45 = vpop.xlane.xlu0 %476 }
 0x42e   :  { %v478_v46 = vrot.slane %v477_v45, 4 }
 0x430   :  { %v479_v47 = vadd.f32 %v478_v46, %v477_v45 }
 0x432   :  { %v480_v48 = vrot.slane %v479_v47, 2 }
 0x434   :  { %v481_v49 = vadd.f32 %v480_v48, %v479_v47 }
 0x436   :  { %v482_v50 = vrot.slane %v481_v49, 1 }
 0x438   :  { %v483_v51 = vadd.f32 %v482_v50, %v481_v49 }
 0x43a   :  { %574 = vpush %v483_v51 }
 0x46b   :  { %s575_s2 = spop %574 }
 0x46c   :  { %s486_s20 = smul.f32 %s575_s2, %s804_s1 }
 0x46e   :  { %488 = sst [smem:[#allocation5]] %s486_s20 }
 0x46f   :  { %496 = dma.smem_to_hbm %s605_s21, 16, %s811_s8, [#allocation6]  }
 0x470   :  { %601 = dma.done.wait [#allocation6], 16  }
 0x471   :  { %602 = vsyncadd [#allocation6], 4294967280 }
 0x472   :  { %500 = sfence }
 0x473   :  { %501 = vsyncpa [#allocation6], 1 }

</bundles_post_ra>
